<compile_context>
chip_gen: v7x
topology: tpu7x:2x2x1
jax: 0.10.0
libtpu: 0.0.40
codegen_flags: <defaults>
</compile_context>

<pallas_src>
import functools

import jax
import jax.numpy as jnp
from jax.experimental import pallas as pl
from jax.experimental.pallas import tpu as pltpu

_LANE = 128      # TPU vreg lane width
_SUBLANE = 8     # f32 sublane height
_TB_MAX = 1024   # max batch-tile rows per grid step


def _round_up(n, m):
    return ((n + m - 1) // m) * m


def _cdiv(a, b):
    return (a + b - 1) // b


def _choose_tiling(batch):
    """Pick (tile_rows, padded_batch).

    Tiles are made as large as possible (<= _TB_MAX rows) to amortize the
    ~0.35 us per-grid-step overhead; when there is enough work the step count
    is forced even and >= 2 so v7x's two TensorCores both get a share (a no-op
    on the single-core v5e/v6e).
    """
    b8 = _round_up(max(batch, 1), _SUBLANE)
    if b8 <= 2 * _SUBLANE:                 # tiny batch: one step, don't split
        return b8, b8
    if b8 <= 2 * _TB_MAX:                  # split into exactly 2 big tiles
        tb = _round_up(_cdiv(b8, 2), _SUBLANE)
        return tb, 2 * tb
    # Large batch: ~_TB_MAX-row tiles, even step count (shrink the tile rather
    # than padding extra rows when the natural count is odd).
    n = _cdiv(b8, _TB_MAX)
    if n % 2:
        n += 1
    tb = _round_up(_cdiv(b8, n), _SUBLANE)
    n = _cdiv(b8, tb)
    if n % 2:
        n += 1
    return tb, n * tb


def _policy_kernel(x_ref, w1_ref, b1_ref, w2_ref, b2_ref, w3_ref, b3_ref,
                   o_ref, *, action_bound, compute_dtype):
    # x_ref / o_ref: per-grid-step batch tiles.  Weights & biases: whole-array
    # VMEM residents (constant across the grid, DMA'd once).  All matmuls
    # accumulate in f32 on the MXU; bias adds / ReLU / tanh / scale stay f32 on
    # VPU+EUP (valid on v5e too — only MXU operands are compute_dtype).
    x = x_ref[...].astype(compute_dtype)

    h = jnp.dot(x, w1_ref[...], preferred_element_type=jnp.float32) + b1_ref[...]
    h = jnp.maximum(h, 0.0)

    h = jnp.dot(h.astype(compute_dtype), w2_ref[...],
                preferred_element_type=jnp.float32) + b2_ref[...]
    h = jnp.maximum(h, 0.0)

    y = jnp.dot(h.astype(compute_dtype), w3_ref[...],
                preferred_element_type=jnp.float32) + b3_ref[...]
    # Lane-dense (tb, 128) store — padding columns carry tanh(0)*bound = 0 and
    # are sliced off in the (jit-fused) wrapper.
    o_ref[...] = (jnp.tanh(y) * action_bound).astype(o_ref.dtype)


def prepare_params(params, compute_dtype=jnp.float32):
    """One-time parameter preparation (call once, reuse every forward).

    * Pads fc3 weight/bias to a multiple of 128 output lanes so the final store
      is an unmasked lane-dense vst (padding columns stay exactly zero).
    * Casts matmul-operand weights to compute_dtype (bf16 halves weight DMA /
      VMEM bytes on all of v5e/v6e/v7x); biases stay f32.
    Returns (prepared_param_tuple, out_size).
    """
    w1, b1, w2, b2, w3, b3 = params
    out_size = w3.shape[1]
    out_pad = _round_up(max(out_size, _LANE), _LANE)
    w3p = jnp.zeros((w3.shape[0], out_pad), w3.dtype).at[:, :out_size].set(w3)
    b3p = jnp.zeros((1, out_pad), b3.dtype).at[:, :out_size].set(b3)
    prepared = (
        w1.astype(compute_dtype), b1.astype(jnp.float32),
        w2.astype(compute_dtype), b2.astype(jnp.float32),
        w3p.astype(compute_dtype), b3p.astype(jnp.float32),
    )
    return prepared, out_size


@functools.partial(
    jax.jit,
    static_argnames=("action_bound", "out_size", "compute_dtype",
                     "return_padded"))
def policy_net_forward(x, prepared, *, action_bound, out_size,
                       compute_dtype=jnp.float32, return_padded=False):
    """x: (B, input_size) f32 -> (B, 1, out_size) f32 (PyTorch forward shape).

    `prepared` comes from prepare_params(); padding/casting happens there, not
    per call.  With return_padded=True the raw (b_pad, 128) lane-dense kernel
    output is returned instead (lets callers skip the slice/reshape copy).
    """
    w1c, b1, w2c, b2, w3c, b3p = prepared
    B, d_in = x.shape
    out_pad = w3c.shape[1]

    tb, b_pad = _choose_tiling(B)
    if b_pad != B:
        x = jnp.pad(x, ((0, b_pad - B), (0, 0)))
    grid = (b_pad // tb,)

    kernel = functools.partial(_policy_kernel,
                               action_bound=float(action_bound),
                               compute_dtype=compute_dtype)

    # Whole-array VMEM residents for the (small) weights & biases.
    vmem_resident = pl.BlockSpec(memory_space=pltpu.MemorySpace.VMEM)

    out = pl.pallas_call(
        kernel,
        out_shape=jax.ShapeDtypeStruct((b_pad, out_pad), jnp.float32),
        grid=grid,
        in_specs=[
            pl.BlockSpec((tb, d_in), lambda i: (i, 0)),   # x batch tile
            vmem_resident, vmem_resident,                  # w1, b1
            vmem_resident, vmem_resident,                  # w2, b2
            vmem_resident, vmem_resident,                  # w3 (padded), b3 (padded)
        ],
        out_specs=pl.BlockSpec((tb, out_pad), lambda i: (i, 0)),
        compiler_params=pltpu.CompilerParams(
            dimension_semantics=("parallel",)),
    )(x, w1c, b1, w2c, b2, w3c, b3p)

    if return_padded:
        return out
    # Slice/reshape stays inside this jit, fused with the kernel launch.
    return out[:B, :out_size].reshape(B, 1, out_size)


def init_params(key, input_size, hidden_size, output_size):
    """Deterministic synthetic parameters (PyTorch-Linear-like uniform init),
    stored as (in, out) matrices for the kernel."""
    k = jax.random.split(key, 6)

    def linear(kw, kb, fan_in, fan_out):
        bound = 1.0 / jnp.sqrt(fan_in)
        w = jax.random.uniform(kw, (fan_in, fan_out), jnp.float32, -bound, bound)
        b = jax.random.uniform(kb, (1, fan_out), jnp.float32, -bound, bound)
        return w, b

    w1, b1 = linear(k[0], k[1], input_size, hidden_size[0])
    w2, b2 = linear(k[2], k[3], hidden_size[0], hidden_size[1])
    w3, b3 = linear(k[4], k[5], hidden_size[1], output_size)
    return (w1, b1, w2, b2, w3, b3)


def reference_forward(x, params, action_bound):
    w1, b1, w2, b2, w3, b3 = params
    h1 = jnp.maximum(x @ w1 + b1, 0.0)
    h2 = jnp.maximum(h1 @ w2 + b2, 0.0)
    y = jnp.tanh(h2 @ w3 + b3) * action_bound
    return y.reshape(x.shape[0], 1, w3.shape[1])


if __name__ == "__main__":
    # Small deterministic problem consistent with the module's forward.
    input_size = 8
    hidden_size = [128, 128]   # nn.Linear defaults in the module
    output_size = 4
    action_bound = 2.0

    key = jax.random.PRNGKey(0)
    kx, kp, kx2 = jax.random.split(key, 3)
    params = init_params(kp, input_size, hidden_size, output_size)

    # One-time padding / casting of parameters (out of the per-call hot path).
    prepared, out_size = prepare_params(params, compute_dtype=jnp.float32)

    # 1) Module-sized case: batch=2 (padded to 8 rows, single grid step).
    batch = 2
    x = jax.random.normal(kx, (batch, input_size), dtype=jnp.float32)
    out = jax.block_until_ready(
        policy_net_forward(x, prepared, action_bound=action_bound,
                           out_size=out_size))
    ref = reference_forward(x, params, action_bound)
    assert out.shape == (batch, 1, output_size)
    assert jnp.allclose(out, ref, atol=1e-5, rtol=1e-5), "mismatch vs reference (B=2)"

    # 2) Larger batch exercising the 2-step parallel grid (152-row tiles so
    #    both v7x TensorCores get work; last rows padded).
    batch2 = 300
    x2 = jax.random.normal(kx2, (batch2, input_size), dtype=jnp.float32)
    out2 = jax.block_until_ready(
        policy_net_forward(x2, prepared, action_bound=action_bound,
                           out_size=out_size))
    ref2 = reference_forward(x2, params, action_bound)
    assert out2.shape == (batch2, 1, output_size)
    assert jnp.allclose(out2, ref2, atol=1e-5, rtol=1e-5), "mismatch vs reference (B=300)"

    # Note: with compute_dtype=jnp.bfloat16 the allclose tolerance must be
    # loosened (operands are quantized); that path is accuracy-opt-in.
    print("KERNEL_OK")
</pallas_src>

<mosaic_0001>
module attributes {stable_mosaic.version = 11 : i64} {
  func.func @_policy_kernel(%arg0: i32, %arg1: memref<8x8xf32, #tpu.memory_space<vmem>>, %arg2: memref<8x128xf32, #tpu.memory_space<vmem>>, %arg3: memref<1x128xf32, #tpu.memory_space<vmem>>, %arg4: memref<128x128xf32, #tpu.memory_space<vmem>>, %arg5: memref<1x128xf32, #tpu.memory_space<vmem>>, %arg6: memref<128x128xf32, #tpu.memory_space<vmem>>, %arg7: memref<1x128xf32, #tpu.memory_space<vmem>>, %arg8: memref<8x128xf32, #tpu.memory_space<vmem>>) attributes {dimension_semantics = [#tpu.dimension_semantics<parallel>], iteration_bounds = array<i64: 1>, scalar_prefetch = 0 : i64, scratch_operands = 0 : i64, tpu.core_type = #tpu.core_type<tc>, window_params = [{transform_indices = @transform_0, window_bounds = array<i64: 8, 8>}, {pipeline_mode = #tpu.pipeline_mode<synchronous>, transform_indices = @transform_1, window_bounds = array<i64: 8, 128>}, {pipeline_mode = #tpu.pipeline_mode<synchronous>, transform_indices = @transform_2, window_bounds = array<i64: 1, 128>}, {pipeline_mode = #tpu.pipeline_mode<synchronous>, transform_indices = @transform_3, window_bounds = array<i64: 128, 128>}, {pipeline_mode = #tpu.pipeline_mode<synchronous>, transform_indices = @transform_4, window_bounds = array<i64: 1, 128>}, {pipeline_mode = #tpu.pipeline_mode<synchronous>, transform_indices = @transform_5, window_bounds = array<i64: 128, 128>}, {pipeline_mode = #tpu.pipeline_mode<synchronous>, transform_indices = @transform_6, window_bounds = array<i64: 1, 128>}, {transform_indices = @transform_7, window_bounds = array<i64: 8, 128>}]} {
    %c0 = arith.constant 0 : index
    %c0_0 = arith.constant 0 : index
    %0 = vector.load %arg1[%c0, %c0_0] : memref<8x8xf32, #tpu.memory_space<vmem>>, vector<8x8xf32>
    %c0_1 = arith.constant 0 : index
    %c0_2 = arith.constant 0 : index
    %1 = vector.load %arg2[%c0_1, %c0_2] : memref<8x128xf32, #tpu.memory_space<vmem>>, vector<8x128xf32>
    %cst = arith.constant dense<0.000000e+00> : vector<8x128xf32>
    %2 = tpu.matmul %0, %1, %cst {dimension_numbers = #tpu.dot_dimension_numbers<[1], [0], [0], [1], [0, 0, 1, 1], [], []>} : vector<8x8xf32>, vector<8x128xf32>, vector<8x128xf32> -> vector<8x128xf32>
    %c0_3 = arith.constant 0 : index
    %c0_4 = arith.constant 0 : index
    %3 = vector.load %arg3[%c0_3, %c0_4] : memref<1x128xf32, #tpu.memory_space<vmem>>, vector<1x128xf32>
    %4 = vector.broadcast %3 : vector<1x128xf32> to vector<8x128xf32>
    %5 = arith.addf %2, %4 : vector<8x128xf32>
    %cst_5 = arith.constant 0.000000e+00 : f32
    %6 = vector.broadcast %cst_5 : f32 to vector<8x128xf32>
    %7 = arith.maximumf %5, %6 : vector<8x128xf32>
    %c0_6 = arith.constant 0 : index
    %c0_7 = arith.constant 0 : index
    %8 = vector.load %arg4[%c0_6, %c0_7] : memref<128x128xf32, #tpu.memory_space<vmem>>, vector<128x128xf32>
    %cst_8 = arith.constant dense<0.000000e+00> : vector<8x128xf32>
    %9 = tpu.matmul %7, %8, %cst_8 {dimension_numbers = #tpu.dot_dimension_numbers<[1], [0], [0], [1], [0, 0, 1, 1], [], []>} : vector<8x128xf32>, vector<128x128xf32>, vector<8x128xf32> -> vector<8x128xf32>
    %c0_9 = arith.constant 0 : index
    %c0_10 = arith.constant 0 : index
    %10 = vector.load %arg5[%c0_9, %c0_10] : memref<1x128xf32, #tpu.memory_space<vmem>>, vector<1x128xf32>
    %11 = vector.broadcast %10 : vector<1x128xf32> to vector<8x128xf32>
    %12 = arith.addf %9, %11 : vector<8x128xf32>
    %cst_11 = arith.constant 0.000000e+00 : f32
    %13 = vector.broadcast %cst_11 : f32 to vector<8x128xf32>
    %14 = arith.maximumf %12, %13 : vector<8x128xf32>
    %c0_12 = arith.constant 0 : index
    %c0_13 = arith.constant 0 : index
    %15 = vector.load %arg6[%c0_12, %c0_13] : memref<128x128xf32, #tpu.memory_space<vmem>>, vector<128x128xf32>
    %cst_14 = arith.constant dense<0.000000e+00> : vector<8x128xf32>
    %16 = tpu.matmul %14, %15, %cst_14 {dimension_numbers = #tpu.dot_dimension_numbers<[1], [0], [0], [1], [0, 0, 1, 1], [], []>} : vector<8x128xf32>, vector<128x128xf32>, vector<8x128xf32> -> vector<8x128xf32>
    %c0_15 = arith.constant 0 : index
    %c0_16 = arith.constant 0 : index
    %17 = vector.load %arg7[%c0_15, %c0_16] : memref<1x128xf32, #tpu.memory_space<vmem>>, vector<1x128xf32>
    %18 = vector.broadcast %17 : vector<1x128xf32> to vector<8x128xf32>
    %19 = arith.addf %16, %18 : vector<8x128xf32>
    %20 = math.tanh %19 : vector<8x128xf32>
    %cst_17 = arith.constant 2.000000e+00 : f32
    %21 = vector.broadcast %cst_17 : f32 to vector<8x128xf32>
    %22 = arith.mulf %20, %21 : vector<8x128xf32>
    %c0_18 = arith.constant 0 : index
    %c0_19 = arith.constant 0 : index
    %23 = vector.load %arg8[%c0_18, %c0_19] : memref<8x128xf32, #tpu.memory_space<vmem>>, vector<8x128xf32>
    tpu.vector_store %arg8[%c0_18, %c0_19], %22 {strides = array<i32>} : memref<8x128xf32, #tpu.memory_space<vmem>>, vector<8x128xf32>,
    return
  }
  func.func @transform_0(%arg0: i32) -> (i32, i32) {
    %c0_i32 = arith.constant 0 : i32
    %c0_i32_0 = arith.constant 0 : i32
    return %arg0, %c0_i32 : i32, i32
  }
  func.func @transform_1(%arg0: i32) -> (i32, i32) {
    %c0_i32 = arith.constant 0 : i32
    %c0_i32_0 = arith.constant 0 : i32
    %c0_i32_1 = arith.constant 0 : i32
    return %c0_i32, %c0_i32_0 : i32, i32
  }
  func.func @transform_2(%arg0: i32) -> (i32, i32) {
    %c0_i32 = arith.constant 0 : i32
    %c0_i32_0 = arith.constant 0 : i32
    %c0_i32_1 = arith.constant 0 : i32
    return %c0_i32, %c0_i32_0 : i32, i32
  }
  func.func @transform_3(%arg0: i32) -> (i32, i32) {
    %c0_i32 = arith.constant 0 : i32
    %c0_i32_0 = arith.constant 0 : i32
    %c0_i32_1 = arith.constant 0 : i32
    return %c0_i32, %c0_i32_0 : i32, i32
  }
  func.func @transform_4(%arg0: i32) -> (i32, i32) {
    %c0_i32 = arith.constant 0 : i32
    %c0_i32_0 = arith.constant 0 : i32
    %c0_i32_1 = arith.constant 0 : i32
    return %c0_i32, %c0_i32_0 : i32, i32
  }
  func.func @transform_5(%arg0: i32) -> (i32, i32) {
    %c0_i32 = arith.constant 0 : i32
    %c0_i32_0 = arith.constant 0 : i32
    %c0_i32_1 = arith.constant 0 : i32
    return %c0_i32, %c0_i32_0 : i32, i32
  }
  func.func @transform_6(%arg0: i32) -> (i32, i32) {
    %c0_i32 = arith.constant 0 : i32
    %c0_i32_0 = arith.constant 0 : i32
    %c0_i32_1 = arith.constant 0 : i32
    return %c0_i32, %c0_i32_0 : i32, i32
  }
  func.func @transform_7(%arg0: i32) -> (i32, i32) {
    %c0_i32 = arith.constant 0 : i32
    %c0_i32_0 = arith.constant 0 : i32
    return %arg0, %c0_i32 : i32, i32
  }
}

</mosaic_0001>

<bundles_post_ra>
// kernel: policy_net_forward.1
= control target key start
LH: loop header
LB: loop body
LE: loop exit
PB: predicated region body
PF: predicated region fallthrough
CT: control target
= control target key end

     0   :  { %12 = vsyncpa [#allocation3], 0  ;;  %s662_s0 = inlined_call_operand.vmem [shape: f32[8,8], index: 0, kind: input, shape index: {}]   ;;  %s663_s1 = inlined_call_operand.vmem [shape: f32[8,128], index: 1, kind: input, shape index: {}]   ;;  %s664_s2 = inlined_call_operand.vmem [shape: f32[1,128], index: 2, kind: input, shape index: {}]   ;;  %s665_s3 = inlined_call_operand.hbm [shape: f32[128,128], index: 3, kind: input, shape index: {}]   ;;  %s666_s4 = inlined_call_operand.vmem [shape: f32[1,128], index: 4, kind: input, shape index: {}]   ;;  %s667_s5 = inlined_call_operand.hbm [shape: f32[128,128], index: 5, kind: input, shape index: {}]   ;;  %s668_s6 = inlined_call_operand.vmem [shape: f32[1,128], index: 6, kind: input, shape index: {}]   ;;  %s669_s7 = inlined_call_operand.vmem [shape: f32[8,128], index: 7, kind: output, shape index: {}]  }
   0x1   :  { %13 = vsyncpa [#allocation5], 0  ;;  %s554_s24 = smov [#allocation2]   ;;  %s506_s28 = scalar_lea.hbm %s665_s3, 2048 }
   0x2   :  { %s25_s25 = sshll.u32 %s554_s24, 4  ;;  %p507_p0 = scmp.ne.s32.totalorder %s665_s3, %s506_s28  ;;  %s26_s25 = int_to_ptr.vmem [resolvable:$true] %s25_s25 }
   0x3   :  { %p510_p1 = scmp.lt.u32.totalorder %s506_s28, %s665_s3 }
   0x5   :  { %p512_p2 = pnand %p510_p1, %p507_p0 }
   0x7   :  { %515 = shalt.err (!%p512_p2)
}
   0x8   :  { %s516_s10 = scalar_lea.vmem %s26_s25, 2048  ;;  %p521_p4 = scmp.lt.s32.totalorder %s26_s25, %s26_s25 }
   0x9   :  { %p517_p3 = scmp.ne.s32.totalorder %s26_s25, %s516_s10  ;;  %p522_p5 = scmp.lt.s32.totalorder %s516_s10, %s516_s10 }
   0xb   :  { %p523_p6 = por %p522_p5, %p521_p4 }
   0xd   :  { %p524_p7 = pnand %p523_p6, %p517_p3 }
   0xf   :  { %527 = shalt.err (!%p524_p7)
}
  0x10   :  { %s555_s11 = smov 128   ;;  %s556_s12 = smov 8  }
  0x11   :  { %31 = dma.hbm_to_vmem [thread:$0]  %s665_s3, 2048, %s26_s25, [#allocation3], %s555_s11, %s555_s11, %s556_s12  }
  0x12   :  { %s557_s15 = smov [#allocation4]   ;;  %s528_s19 = scalar_lea.hbm %s667_s5, 2048 }
  0x13   :  { %s39_s16 = sshll.u32 %s557_s15, 4  ;;  %p529_p8 = scmp.ne.s32.totalorder %s667_s5, %s528_s19  ;;  %s40_s16 = int_to_ptr.vmem [resolvable:$true] %s39_s16 }
  0x14   :  { %p532_p9 = scmp.lt.u32.totalorder %s528_s19, %s667_s5 }
  0x16   :  { %p534_p10 = pnand %p532_p9, %p529_p8 }
  0x18   :  { %537 = shalt.err (!%p534_p10)
}
  0x19   :  { %s538_s24 = scalar_lea.vmem %s40_s16, 2048  ;;  %p543_p12 = scmp.lt.s32.totalorder %s40_s16, %s40_s16 }
  0x1a   :  { %p539_p11 = scmp.ne.s32.totalorder %s40_s16, %s538_s24  ;;  %p544_p13 = scmp.lt.s32.totalorder %s538_s24, %s538_s24 }
  0x1c   :  { %p545_p0 = por %p544_p13, %p543_p12 }
  0x1e   :  { %p546_p1 = pnand %p545_p0, %p539_p11 }
  0x20   :  { %549 = shalt.err (!%p546_p1)
}
  0x21   :  { %45 = dma.hbm_to_vmem [thread:$0]  %s667_s5, 2048, %s40_s16, [#allocation5], %s555_s11, %s555_s11, %s556_s12  }
  0x22   :  { %550 = dma.done.wait [#allocation3], 2048  }
  0x23   :  { %551 = vsyncadd [#allocation3], 4294965248 }
  0x24   :  { %552 = dma.done.wait [#allocation5], 2048  }
  0x25   :  { %553 = vsyncadd [#allocation5], 4294965248  ;;  %v558_v0 = vmov 0.0   ;;  %vm559_vm0 = vmmov 0   ;;  %v560_v1 = vmov 0.0|0.0   ;;  %vm63_vm1 = vcmask 64512  }
  0x26   :  { %374 = vmatprep.subr.mxu0 %v558_v0  ;;  %376 = vmatprep.mubr.msk.f32.mxu0 %vm559_vm0, %v558_v0  ;;  %v55_v2 = vld [vmem:[%s663_s1] sm:$0xff]  ;;  %v138_v4 = vld [vmem:[#allocation2] sm:$0xff]  ;;  %v139_v5 = vld [vmem:[#allocation2 + $0x8] sm:$0xff] }
  0x27   :  { %449 = vmatprep.subr.bf16.mxu1 %v560_v1  ;;  %411 = vmatprep.mubr.msk.f32.mxu1 %vm559_vm0, %v558_v0  ;;  %v54_v3 = vld [vmem:[%s662_s0] sm:$0xff]  ;;  %v140_v6 = vld [vmem:[#allocation2 + $0x10] sm:$0xff]  ;;  %v450_v8 = vpack.c.bf16 %v139_v5, %v138_v4  ;;  %v142_v10 = vld [vmem:[#allocation2 + $0x20] sm:$0xff] }
  0x28   :  { %375 = vmatpush3.msra.mxu0 %v55_v2  ;;  %v141_v7 = vld [vmem:[#allocation2 + $0x18] sm:$0xff]  ;;  %v143_v11 = vld [vmem:[#allocation2 + $0x28] sm:$0xff]  ;;  %v144_v13 = vld [vmem:[#allocation2 + $0x30] sm:$0xff] }
  0x29   :  { %377 = vmatmul.mubr.msk.f32.vlgmr.msra.gmra.mrb[0].mxu0 %vm63_vm1, %v54_v3  ;;  %473 = vmatprep.subr.bf16.mxu0 %v560_v1  ;;  %v453_v9 = vpack.c.bf16 %v141_v7, %v140_v6  ;;  %v456_v12 = vpack.c.bf16 %v143_v11, %v142_v10  ;;  %v145_v14 = vld [vmem:[#allocation2 + $0x38] sm:$0xff]  ;;  %v146_v16 = vld [vmem:[#allocation2 + $0x40] sm:$0xff]  ;;  %v147_v17 = vld [vmem:[#allocation2 + $0x48] sm:$0xff] }
  0x2a   :  { %446 = vmatprep.mubr.msk.f32.mxu0 %vm559_vm0, %v558_v0  ;;  %451 = vmatpush3.bf16.msra.mxu1 %v450_v8  ;;  %v459_v15 = vpack.c.bf16 %v145_v14, %v144_v13  ;;  %v462_v18 = vpack.c.bf16 %v147_v17, %v146_v16  ;;  %v148_v19 = vld [vmem:[#allocation2 + $0x50] sm:$0xff]  ;;  %v149_v20 = vld [vmem:[#allocation2 + $0x58] sm:$0xff]  ;;  %v150_v22 = vld [vmem:[#allocation2 + $0x60] sm:$0xff] }
  0x2b   :  { %452 = vmatprep.subr.bf16.mxu1 %v560_v1  ;;  %v465_v21 = vpack.c.bf16 %v149_v20, %v148_v19  ;;  %v151_v23 = vld [vmem:[#allocation2 + $0x68] sm:$0xff]  ;;  %v152_v25 = vld [vmem:[#allocation2 + $0x70] sm:$0xff]  ;;  %v153_v26 = vld [vmem:[#allocation2 + $0x78] sm:$0xff] }
  0x2c   :  { %v468_v24 = vpack.c.bf16 %v151_v23, %v150_v22  ;;  %v471_v27 = vpack.c.bf16 %v153_v26, %v152_v25  ;;  %v232_v28 = vld [vmem:[#allocation4] sm:$0xff]  ;;  %v233_v29 = vld [vmem:[#allocation4 + $0x8] sm:$0xff]  ;;  %v234_v30 = vld [vmem:[#allocation4 + $0x10] sm:$0xff] }
  0x2d   :  { %v474_v31 = vpack.c.bf16 %v233_v29, %v232_v28  ;;  %v235_v32 = vld [vmem:[#allocation4 + $0x18] sm:$0xff]  ;;  %v236_v34 = vld [vmem:[#allocation4 + $0x20] sm:$0xff]  ;;  %v237_v35 = vld [vmem:[#allocation4 + $0x28] sm:$0xff] }
  0x2e   :  { %454 = vmatpush3.bf16.msra.mxu1 %v453_v9  ;;  %v477_v33 = vpack.c.bf16 %v235_v32, %v234_v30  ;;  %v480_v36 = vpack.c.bf16 %v237_v35, %v236_v34  ;;  %v238_v37 = vld [vmem:[#allocation4 + $0x30] sm:$0xff]  ;;  %v239_v38 = vld [vmem:[#allocation4 + $0x38] sm:$0xff]  ;;  %v240_v40 = vld [vmem:[#allocation4 + $0x40] sm:$0xff] }
  0x2f   :  { %455 = vmatprep.subr.bf16.mxu1 %v560_v1  ;;  %475 = vmatpush3.bf16.msra.mxu0 %v474_v31  ;;  %v483_v39 = vpack.c.bf16 %v239_v38, %v238_v37  ;;  %v241_v41 = vld [vmem:[#allocation4 + $0x48] sm:$0xff]  ;;  %v242_v43 = vld [vmem:[#allocation4 + $0x50] sm:$0xff]  ;;  %v243_v44 = vld [vmem:[#allocation4 + $0x58] sm:$0xff] }
  0x30   :  { %476 = vmatprep.subr.bf16.mxu0 %v560_v1  ;;  %v486_v42 = vpack.c.bf16 %v241_v41, %v240_v40  ;;  %v489_v45 = vpack.c.bf16 %v243_v44, %v242_v43  ;;  %v244_v46 = vld [vmem:[#allocation4 + $0x60] sm:$0xff]  ;;  %v245_v47 = vld [vmem:[#allocation4 + $0x68] sm:$0xff]  ;;  %v334_v49 = vld [vmem:[%s664_s2] ss:$0 sm:$0xff] }
  0x31   :  { %v492_v48 = vpack.c.bf16 %v245_v47, %v244_v46  ;;  %v246_v54 = vld [vmem:[#allocation4 + $0x70] sm:$0xff]  ;;  %v247_v55 = vld [vmem:[#allocation4 + $0x78] sm:$0xff] }
  0x32   :  { %457 = vmatpush3.bf16.msra.mxu1 %v456_v12  ;;  %v495_v56 = vpack.c.bf16 %v247_v55, %v246_v54  ;;  %v336_v57 = vld [vmem:[%s666_s4] ss:$0 sm:$0xff] }
  0x33   :  { %458 = vmatprep.subr.bf16.mxu1 %v560_v1  ;;  %478 = vmatpush3.bf16.msra.mxu0 %v477_v33  ;;  %v337_v62 = vld [vmem:[%s668_s6] ss:$0 sm:$0xff] }
  0x34   :  { %479 = vmatprep.subr.bf16.mxu0 %v560_v1 }
  0x36   :  { %460 = vmatpush3.bf16.msra.mxu1 %v459_v15 }
  0x37   :  { %461 = vmatprep.subr.bf16.mxu1 %v560_v1  ;;  %481 = vmatpush3.bf16.msra.mxu0 %v480_v36 }
  0x38   :  { %482 = vmatprep.subr.bf16.mxu0 %v560_v1 }
  0x3a   :  { %463 = vmatpush3.bf16.msra.mxu1 %v462_v18 }
  0x3b   :  { %464 = vmatprep.subr.bf16.mxu1 %v560_v1  ;;  %484 = vmatpush3.bf16.msra.mxu0 %v483_v39 }
  0x3c   :  { %485 = vmatprep.subr.bf16.mxu0 %v560_v1 }
  0x3e   :  { %466 = vmatpush3.bf16.msra.mxu1 %v465_v21 }
  0x3f   :  { %467 = vmatprep.subr.bf16.mxu1 %v560_v1  ;;  %487 = vmatpush3.bf16.msra.mxu0 %v486_v42 }
  0x40   :  { %488 = vmatprep.subr.bf16.mxu0 %v560_v1 }
  0x42   :  { %469 = vmatpush3.bf16.msra.mxu1 %v468_v24 }
  0x43   :  { %470 = vmatprep.subr.bf16.mxu1 %v560_v1  ;;  %490 = vmatpush3.bf16.msra.mxu0 %v489_v45 }
  0x44   :  { %491 = vmatprep.subr.bf16.mxu0 %v560_v1 }
  0x46   :  { %472 = vmatpush3.bf16.msra.mxu1 %v471_v27 }
  0x47   :  { %493 = vmatpush3.bf16.msra.mxu0 %v492_v48 }
  0x48   :  { %494 = vmatprep.subr.bf16.mxu0 %v560_v1 }
  0x4b   :  { %496 = vmatpush3.bf16.msra.mxu0 %v495_v56 }
  0xfc   :  { %v133_v50 = vpop.f32.mrb[0].mxu0 }
  0xfd   :  { %v134_v51 = vadd.f32 %v334_v49, %v133_v50  ;;  %v378_v52 = vpop.f32.mrb[1].mxu0 }
  0xff   :  { %v137_v53 = vmax.f32 %v134_v51, 0.0 }
 0x101   :  { %412 = vmatmul.mubr.f32.vlgmr.msra.gmra.mrb[0].mxu1 %v137_v53 }
 0x1d4   :  { %v227_v58 = vpop.f32.mrb[0].mxu1 }
 0x1d5   :  { %v228_v59 = vadd.f32 %v336_v57, %v227_v58  ;;  %v413_v60 = vpop.f32.mrb[1].mxu1 }
 0x1d7   :  { %v231_v61 = vmax.f32 %v228_v59, 0.0 }
 0x1d9   :  { %447 = vmatmul.mubr.f32.vlgmr.msra.gmra.mrb[2].mxu0 %v231_v61 }
 0x2ac   :  { %v321_v63 = vpop.f32.mrb[2].mxu0 }
 0x2ad   :  { %v322_v0 = vadd.f32 %v337_v62, %v321_v63  ;;  %v448_v1 = vpop.f32.mrb[3].mxu0 }
 0x2af   :  { %504 = vtanh.f32 %v322_v0 }
 0x2b9   :  { %v505_v2 = vpop.eup %504 }
 0x2ba   :  { %v326_v3 = vmul.f32 2.0, %v505_v2 }
 0x2bc   :  { %327 = vst [vmem:[%s669_s7] sm:$0xff] %v326_v3 }
 0x2bd   :  { %332 = vsyncpa [#allocation3], 1 }
 0x2be   :  { %333 = vsyncpa [#allocation5], 1 }

</bundles_post_ra>
